<compile_context>
chip_gen: v5e
topology: v5e:2x2
jax: 0.10.0
libtpu: 0.0.40
codegen_flags: <defaults>
</compile_context>

<pallas_src>
import jax
import jax.numpy as jnp
from jax.experimental import pallas as pl
from jax.experimental.pallas import tpu as pltpu


def _round_up(x, m):
    return (x + m - 1) // m * m


def _vmem_capacity_bytes():
    try:
        return int(pltpu.get_tpu_info().vmem_capacity_bytes)
    except Exception:
        # Conservative fallback (v7x per-TC size) -- safe on every generation.
        return 64 * 1024 * 1024


def _select_tiles(E, V, Bp, out_bytes):
    """Pick (tm, tv, Vp, vmem_limit) so double-buffered tiles fit this chip."""
    vmem = _vmem_capacity_bytes()
    budget = int(vmem * 0.6)
    tm = 256
    Vp128 = _round_up(V, 128)
    tv = 128
    for cand in (2048, 1024, 512, 256, 128):
        if cand > Vp128 and cand != 128:
            continue
        need = 2 * (tm * E * 2            # x tile (bf16)
                    + E * cand * 2        # wx tile (bf16, resident but 2-buffered)
                    + Bp * cand * 4       # ctx tile (f32)
                    + tm * Bp * 4         # selector tile (f32)
                    + tm * cand * out_bytes)
        if need <= budget:
            tv = cand
            break
    Vp = _round_up(Vp128, tv)
    vmem_limit = max(32 << 20, min(int(vmem * 0.75), 112 << 20))
    return tm, tv, Vp, vmem_limit


# -----------------------------------------------------------------------------
# Kernel:  o[m_tile, v_tile] = x[m_tile, :] @ wx[:, v_tile]
#                              + sel[m_tile, :] @ ctx[:, v_tile]
# ctx already contains state @ Ws + b (hoisted); sel is the per-row batch
# one-hot, so the ctx term adds the right batch row to every flattened row.
# -----------------------------------------------------------------------------
def decoder_proj_kernel(x_ref, wx_ref, ctx_ref, sel_ref, o_ref):
    acc = jnp.dot(x_ref[...], wx_ref[...],
                  preferred_element_type=jnp.float32)          # (tm, tv) f32
    acc = acc + jnp.dot(sel_ref[...], ctx_ref[...],
                        preferred_element_type=jnp.float32)    # (tm,Bp)@(Bp,tv)
    o_ref[...] = acc.astype(o_ref.dtype)


def decoder_projection(x, wx_p, ctx_p, sel, *, tm, tv, vmem_limit, out_dtype):
    """x: (Mp, E) bf16, wx_p: (E, Vp) bf16, ctx_p: (Bp, Vp) f32, sel: (Mp, Bp) f32."""
    Mp, E = x.shape
    Vp = wx_p.shape[1]
    Bp = ctx_p.shape[0]
    out_bytes = jnp.dtype(out_dtype).itemsize

    # Vocab tiles outermost -> each (E, tv) weight tile is DMA'd exactly once;
    # M innermost gives many independent tiles for megacore sharding.
    grid = (Vp // tv, Mp // tm)

    flops = 2 * Mp * Vp * (E + Bp)
    bytes_accessed = (Mp * E * 2 + E * Vp * 2 + Bp * Vp * 4 + Mp * Bp * 4
                      + Mp * Vp * out_bytes)

    return pl.pallas_call(
        decoder_proj_kernel,
        out_shape=jax.ShapeDtypeStruct((Mp, Vp), out_dtype),
        grid=grid,
        in_specs=[
            pl.BlockSpec((tm, E), lambda v, m: (m, 0)),    # activations
            pl.BlockSpec((E, tv), lambda v, m: (0, v)),    # weights (resident over m)
            pl.BlockSpec((Bp, tv), lambda v, m: (0, v)),   # hoisted ctx proj (resident)
            pl.BlockSpec((tm, Bp), lambda v, m: (m, 0)),   # per-row batch selector
        ],
        out_specs=pl.BlockSpec((tm, tv), lambda v, m: (m, v)),
        compiler_params=pltpu.CompilerParams(
            dimension_semantics=("parallel", "parallel"),
            vmem_limit_bytes=vmem_limit,
        ),
        cost_estimate=pl.CostEstimate(flops=flops, transcendentals=0,
                                      bytes_accessed=bytes_accessed),
    )(x, wx_p, ctx_p, sel)


# -----------------------------------------------------------------------------
# Decoder "module": interface matches the PyTorch base class
#   init_state(enc_all_outputs) -> state
#   forward(X, state) -> (output, state)
# -----------------------------------------------------------------------------
class PallasDecoder:
    def __init__(self, embed_dim, hidden_dim, vocab_size, key,
                 out_dtype=jnp.bfloat16):
        kx, ks, kb = jax.random.split(key, 3)
        self.embed_dim = embed_dim
        self.hidden_dim = hidden_dim
        self.vocab_size = vocab_size
        self.out_dtype = out_dtype

        # Generation-aware tile selection, done once at construction.
        self._Bp_default = 8
        self.tm, self.tv, self.Vp, self.vmem_limit = _select_tiles(
            embed_dim, vocab_size, self._Bp_default,
            jnp.dtype(out_dtype).itemsize)

        pad_v = self.Vp - vocab_size
        # Weights stored bf16 and pre-padded to Vp ONCE (no per-forward copy).
        self.wx = jnp.pad(
            (jax.random.normal(kx, (embed_dim, vocab_size), jnp.float32) * 0.02
             ).astype(jnp.bfloat16), ((0, 0), (0, pad_v)))
        self.ws = jnp.pad(
            (jax.random.normal(ks, (hidden_dim, vocab_size), jnp.float32) * 0.02
             ).astype(jnp.bfloat16), ((0, 0), (0, pad_v)))
        self.b = jnp.pad(
            jax.random.normal(kb, (1, vocab_size), jnp.float32) * 0.02,
            ((0, 0), (0, pad_v)))

    def init_state(self, enc_all_outputs, *args):
        # enc_all_outputs: (batch, seq, hidden) -> last timestep as context.
        return enc_all_outputs[:, -1, :]  # (batch, hidden)

    def forward(self, X, state):
        # X: (batch, seq, embed), state: (batch, hidden)
        B, S, E = X.shape
        V = self.vocab_size

        # Hoisted context projection (identical for all S timesteps), bias
        # folded in; ws/b are already Vp-padded so no weight copy here.
        ctx = state.astype(jnp.float32) @ self.ws.astype(jnp.float32) + self.b

        # Flatten (B, S) -> M so every grid step feeds a full tm to the MXU.
        M = B * S
        tm = min(self.tm, _round_up(M, 8))
        Mp = _round_up(M, tm)
        Bp = max(self._Bp_default, _round_up(B, 8))

        x_flat = X.astype(jnp.bfloat16).reshape(M, E)
        if Mp != M:
            x_flat = jnp.pad(x_flat, ((0, Mp - M), (0, 0)))
        ctx_p = jnp.pad(ctx, ((0, Bp - B), (0, 0)))      # tiny (Bp, Vp)

        # Per-row batch selector (Mp, Bp): flattened row r belongs to batch
        # r // S.  Padded rows / padded batches select zero ctx rows.
        rows = jnp.arange(Mp, dtype=jnp.int32)
        sel = (rows[:, None] // S ==
               jnp.arange(Bp, dtype=jnp.int32)[None, :]).astype(jnp.float32)

        out = decoder_projection(x_flat, self.wx, ctx_p, sel,
                                 tm=tm, tv=self.tv,
                                 vmem_limit=self.vmem_limit,
                                 out_dtype=self.out_dtype)
        out = out[:M, :V].reshape(B, S, V)
        return out, state


# -----------------------------------------------------------------------------
# Pure-JAX reference for correctness checking (same bf16 operand precision)
# -----------------------------------------------------------------------------
def reference_forward(dec, X, state):
    V = dec.vocab_size
    wx32 = dec.wx[:, :V].astype(jnp.float32)
    ws32 = dec.ws[:, :V].astype(jnp.float32)
    b32 = dec.b[:, :V]
    x32 = X.astype(jnp.bfloat16).astype(jnp.float32)
    ctx = state.astype(jnp.float32) @ ws32 + b32          # (B, V)
    return x32 @ wx32 + ctx[:, None, :]


if __name__ == "__main__":
    key = jax.random.PRNGKey(0)
    k_enc, k_x, k_param = jax.random.split(key, 3)

    batch, seq, embed, hidden, vocab = 2, 8, 32, 32, 64

    # Synthetic encoder outputs and decoder input.
    enc_all_outputs = jax.random.normal(k_enc, (batch, seq, hidden), jnp.float32)
    X = jax.random.normal(k_x, (batch, seq, embed), jnp.float32)

    dec = PallasDecoder(embed, hidden, vocab, k_param)

    state = dec.init_state(enc_all_outputs)
    out, new_state = dec.forward(X, state)
    out = jax.block_until_ready(out)

    ref = reference_forward(dec, X, state)
    assert out.shape == (batch, seq, vocab), out.shape
    assert jnp.allclose(out.astype(jnp.float32), ref, atol=3e-2, rtol=3e-2), \
        "mismatch vs reference"

    print("KERNEL_OK")
</pallas_src>

<mosaic_0001>
module attributes {stable_mosaic.version = 11 : i64} {
  func.func @decoder_proj_kernel(%arg0: i32, %arg1: i32, %arg2: memref<16x32xbf16, #tpu.memory_space<vmem>>, %arg3: memref<32x128xbf16, #tpu.memory_space<vmem>>, %arg4: memref<8x128xf32, #tpu.memory_space<vmem>>, %arg5: memref<16x8xf32, #tpu.memory_space<vmem>>, %arg6: memref<16x128xbf16, #tpu.memory_space<vmem>>) attributes {dimension_semantics = [#tpu.dimension_semantics<parallel>, #tpu.dimension_semantics<parallel>], iteration_bounds = array<i64: 1, 1>, scalar_prefetch = 0 : i64, scratch_operands = 0 : i64, tpu.core_type = #tpu.core_type<tc>, window_params = [{transform_indices = @transform_0, window_bounds = array<i64: 16, 32>}, {transform_indices = @transform_1, window_bounds = array<i64: 32, 128>}, {transform_indices = @transform_2, window_bounds = array<i64: 8, 128>}, {transform_indices = @transform_3, window_bounds = array<i64: 16, 8>}, {transform_indices = @transform_4, window_bounds = array<i64: 16, 128>}]} {
    %c0 = arith.constant 0 : index
    %c0_0 = arith.constant 0 : index
    %0 = vector.load %arg2[%c0, %c0_0] : memref<16x32xbf16, #tpu.memory_space<vmem>>, vector<16x32xbf16>
    %c0_1 = arith.constant 0 : index
    %c0_2 = arith.constant 0 : index
    %1 = vector.load %arg3[%c0_1, %c0_2] : memref<32x128xbf16, #tpu.memory_space<vmem>>, vector<32x128xbf16>
    %cst = arith.constant dense<0.000000e+00> : vector<16x128xf32>
    %2 = tpu.matmul %0, %1, %cst {dimension_numbers = #tpu.dot_dimension_numbers<[1], [0], [0], [1], [0, 0, 1, 1], [], []>} : vector<16x32xbf16>, vector<32x128xbf16>, vector<16x128xf32> -> vector<16x128xf32>
    %c0_3 = arith.constant 0 : index
    %c0_4 = arith.constant 0 : index
    %3 = vector.load %arg5[%c0_3, %c0_4] : memref<16x8xf32, #tpu.memory_space<vmem>>, vector<16x8xf32>
    %c0_5 = arith.constant 0 : index
    %c0_6 = arith.constant 0 : index
    %4 = vector.load %arg4[%c0_5, %c0_6] : memref<8x128xf32, #tpu.memory_space<vmem>>, vector<8x128xf32>
    %cst_7 = arith.constant dense<0.000000e+00> : vector<16x128xf32>
    %5 = tpu.matmul %3, %4, %cst_7 {dimension_numbers = #tpu.dot_dimension_numbers<[1], [0], [0], [1], [0, 0, 1, 1], [], []>} : vector<16x8xf32>, vector<8x128xf32>, vector<16x128xf32> -> vector<16x128xf32>
    %6 = arith.addf %2, %5 : vector<16x128xf32>
    %7 = arith.truncf %6 : vector<16x128xf32> to vector<16x128xbf16>
    %c0_8 = arith.constant 0 : index
    %c0_9 = arith.constant 0 : index
    %8 = vector.load %arg6[%c0_8, %c0_9] : memref<16x128xbf16, #tpu.memory_space<vmem>>, vector<16x128xbf16>
    tpu.vector_store %arg6[%c0_8, %c0_9], %7 {strides = array<i32>} : memref<16x128xbf16, #tpu.memory_space<vmem>>, vector<16x128xbf16>,
    return
  }
  func.func @transform_0(%arg0: i32, %arg1: i32) -> (i32, i32) {
    %c0_i32 = arith.constant 0 : i32
    %c0_i32_0 = arith.constant 0 : i32
    return %arg1, %c0_i32 : i32, i32
  }
  func.func @transform_1(%arg0: i32, %arg1: i32) -> (i32, i32) {
    %c0_i32 = arith.constant 0 : i32
    %c0_i32_0 = arith.constant 0 : i32
    return %c0_i32, %arg0 : i32, i32
  }
  func.func @transform_2(%arg0: i32, %arg1: i32) -> (i32, i32) {
    %c0_i32 = arith.constant 0 : i32
    %c0_i32_0 = arith.constant 0 : i32
    return %c0_i32, %arg0 : i32, i32
  }
  func.func @transform_3(%arg0: i32, %arg1: i32) -> (i32, i32) {
    %c0_i32 = arith.constant 0 : i32
    %c0_i32_0 = arith.constant 0 : i32
    return %arg1, %c0_i32 : i32, i32
  }
  func.func @transform_4(%arg0: i32, %arg1: i32) -> (i32, i32) {
    %c0_i32 = arith.constant 0 : i32
    return %arg1, %arg0 : i32, i32
  }
}

</mosaic_0001>

<bundles_post_ra>
// kernel: tpu_custom_call.1
= control target key start
LH: loop header
LB: loop body
LE: loop exit
PB: predicated region body
PF: predicated region fallthrough
CT: control target
= control target key end

     0   :  { %9 = vsyncpa [#allocation3], 0  ;;  %s259_s0 = inlined_call_operand.vmem [shape: bf16[16,32], index: 0, kind: input, shape index: {}]   ;;  %s260_s1 = inlined_call_operand.vmem [shape: bf16[32,128], index: 1, kind: input, shape index: {}]   ;;  %s261_s2 = inlined_call_operand.hbm [shape: f32[8,128], index: 2, kind: input, shape index: {}]   ;;  %s262_s3 = inlined_call_operand.vmem [shape: f32[16,8], index: 3, kind: input, shape index: {}]   ;;  %s263_s4 = inlined_call_operand.hbm [shape: bf16[16,128], index: 4, kind: output, shape index: {}]  }
   0x1   :  { %10 = vsyncpa [#allocation4], 0  ;;  %s20_s17 = sshll.u32 %s261_s2, 4  ;;  %s209_s18 = smov [#allocation2]   ;;  %s21_s17 = int_to_ptr.hbm [resolvable:$true] %s20_s17 }
   0x2   :  { %s22_s19 = sshll.u32 %s209_s18, 4  ;;  %s23_s19 = int_to_ptr.vmem [resolvable:$true] %s22_s19 }
   0x3   :  { %25 = dma.hbm_to_vmem [thread:$0]  %s21_s17, 128, %s23_s19, [#allocation3]  }
   0x4   :  { %205 = dma.done.wait [#allocation3], 128  }
   0x5   :  { %206 = vsyncadd [#allocation3], 4294967168  ;;  %vm42_vm0 = vcmask 64512   ;;  %v147_v0 = vld [vmem:[%s260_s1 + $0x8] sm:$0xff]  ;;  %v41_v1 = vld [vmem:[#allocation2] sm:$0xff]  ;;  %vm89_vm1 = vcmask 261120  }
   0x6   :  { %64 = vmatpush.msra.mxu0 %v41_v1  ;;  %v39_v2 = vld [vmem:[%s262_s3] sm:$0xff]  ;;  %99 = vmatpush.bf16.msra.mxu1 %v147_v0  ;;  %v40_v5 = vld [vmem:[%s262_s3 + $0x8] sm:$0xff]  ;;  %s210_s29 = smov [#allocation5]   ;;  %s117_s6 = sshll.u32 %s263_s4, 4  ;;  %s118_s6 = int_to_ptr.hbm [resolvable:$true] %s117_s6 }
   0x7   :  { %v146_v3 = vld [vmem:[%s260_s1] sm:$0xff]  ;;  %130 = vmatmul.msk.f32.vlgmr.msra.gmra.mxu0 %vm42_vm0, %v39_v2  ;;  %s115_s30 = sshll.u32 %s210_s29, 4  ;;  %s212_s3 = smov 4   ;;  %s116_s30 = int_to_ptr.vmem [resolvable:$true] %s115_s30 }
   0x8   :  { %v145_v4 = vld [vmem:[%s259_s0] sm:$0xff]  ;;  %s211_s0 = smov 64  }
   0xa   :  { %100 = vmatpush.bf16.msra.mxu1 %v146_v3 }
   0xd   :  { %144 = vmatmul.msk.bf16.vlgmr.msra.gmra.mxu1 %vm89_vm1, %v145_v4 }
   0xf   :  { %131 = vmatmul.msk.f32.gmra.mxu0 %vm42_vm0, %v40_v5 }
  0x84   :  { %v66_v6 = vpop.f32.mrf.mxu0 }
  0x8a   :  { %v102_v7 = vpop.f32.mrf.mxu1 }
  0x8b   :  { %v103_v10 = vadd.f32 %v102_v7, %v66_v6 }
  0x8c   :  { %v69_v8 = vpop.f32.mrf.mxu0 }
  0x92   :  { %v104_v9 = vpop.f32.mrf.mxu1 }
  0x93   :  { %v105_v11 = vadd.f32 %v104_v9, %v69_v8 }
  0x95   :  { %v151_v12 = vpack.c.bf16 %v105_v11, %v103_v10 }
  0x97   :  { %152 = vst [vmem:[#allocation5] sm:$0xff] %v151_v12  }
  0x98   :  { %123 = dma.vmem_to_hbm [thread:$0]  %s116_s30, 128, %s118_s6, [#allocation4], %s211_s0, %s211_s0, %s212_s3  }
  0x99   :  { %207 = dma.done.wait [#allocation4], 128  }
  0x9a   :  { %208 = vsyncadd [#allocation4], 4294967168 }
  0x9b   :  { %128 = vsyncpa [#allocation3], 1 }
  0x9c   :  { %129 = vsyncpa [#allocation4], 1 }

</bundles_post_ra>
